<compile_context>
chip_gen: v7x
topology: tpu7x:2x2x1
jax: 0.10.0
libtpu: 0.0.40
codegen_flags: <defaults>
</compile_context>

<pallas_src>
import functools
import math

import jax
import jax.numpy as jnp
from jax.experimental import pallas as pl
from jax.experimental.pallas import tpu as pltpu


def _interaction_kernel(q_ref, k_ref, wq_ref, bq_ref, wk_ref, bk_ref,
                        out_ref, q_cache,
                        *, num_heads, qk_dim, scale, mm_dtype):
    """One (batch, q_tile, k_tile) grid cell.

    Shapes inside the kernel:
      q_ref  : (1, tq, E)     activations, compute dtype
      k_ref  : (1, tk, E)
      wq_ref : (E, H*D)       compute dtype (nn.Linear weight, transposed)
      bq_ref : (1, H*D)       f32
      wk_ref : (E, H*D)
      bk_ref : (1, H*D)       f32
      out_ref: (1, H, tq, tk) out dtype -- lane-dense over tk
      q_cache: (tq, H*D)      VMEM scratch, mm_dtype; persists over the ki axis
    """
    d = qk_dim

    # Project q only once per (batch, q_tile): the ki grid axis is innermost
    # and "arbitrary" (sequential), so the scratch survives the whole k sweep.
    @pl.when(pl.program_id(2) == 0)
    def _():
        q2 = jnp.dot(q_ref[0], wq_ref[...],
                     preferred_element_type=jnp.float32)           # (tq, H*D)
        q2 = (q2 + bq_ref[...]) * scale                            # f32 scale
        q_cache[...] = q2.astype(q_cache.dtype)

    # Project this k tile: ONE lane-dense 2-D MXU matmul (lane width H*D),
    # f32 accumulation, then cast to the interaction dtype.
    k2 = jnp.dot(k_ref[0], wk_ref[...],
                 preferred_element_type=jnp.float32) + bk_ref[...]  # (tk, H*D)
    k2 = k2.astype(mm_dtype)
    q2 = q_cache[...]                                               # (tq, H*D)

    # Per-head interaction: static lane slices (cheap) + one (tq,D)x(tk,D)^T
    # MXU matmul + one lane-dense (tq, tk) store per head.
    for h in range(num_heads):
        qh = q2[:, h * d:(h + 1) * d]                               # (tq, D)
        kh = k2[:, h * d:(h + 1) * d]                               # (tk, D)
        out_h = jnp.einsum('qd,kd->qk', qh, kh,
                           preferred_element_type=jnp.float32)      # (tq, tk)
        out_ref[0, h, :, :] = out_h.astype(out_ref.dtype)


def interaction_layer(query, key, wq, bq, wk, bk, *, num_heads, qk_dim,
                      q_tile=512, k_tile=512,
                      compute_dtype=jnp.bfloat16,
                      out_dtype=jnp.bfloat16,
                      output_layout="bqkn"):
    """query: (b, q_len, E); key: (b, k_len, E).
    wq, wk: (H*D, E) in PyTorch nn.Linear layout; bq, bk: (H*D,).
    output_layout="bqkn": (b, q_len, k_len, H) PyTorch parity (wrapper
    transpose).  output_layout="bnqk": lane-dense (b, H, q_len, k_len), the
    preferred fast path (no extra HBM pass)."""
    bsz, q_len, embed_dim = query.shape
    _, k_len, _ = key.shape
    h, d = num_heads, qk_dim
    hd = h * d
    scale = float(qk_dim) ** (-0.5)

    if compute_dtype is None:
        compute_dtype = query.dtype

    # nn.Linear weight (out=H*D, in=E) -> (E, H*D) so the kernel runs one
    # lane-dense matmul per side.  Column h*D+dd == head h, dim dd (matches
    # the PyTorch .view(b, len, H, D)).  Biases stay f32 (added to f32 accum).
    wq_t = wq.T.astype(compute_dtype)
    wk_t = wk.T.astype(compute_dtype)
    bq_r = bq.reshape(1, hd).astype(jnp.float32)
    bk_r = bk.reshape(1, hd).astype(jnp.float32)
    query_c = query.astype(compute_dtype)
    key_c = key.astype(compute_dtype)

    tq = min(q_tile, q_len)
    tk = min(k_tile, k_len)
    grid = (bsz, pl.cdiv(q_len, tq), pl.cdiv(k_len, tk))

    kernel = functools.partial(_interaction_kernel, num_heads=h, qk_dim=d,
                               scale=scale, mm_dtype=compute_dtype)

    # Advisory cost model so XLA can overlap surrounding ops with the kernel.
    in_itemsize = jnp.dtype(compute_dtype).itemsize
    out_itemsize = jnp.dtype(out_dtype).itemsize
    flops = (2 * bsz * (q_len + k_len) * embed_dim * hd
             + 2 * bsz * h * q_len * k_len * d)
    bytes_accessed = (int(query_c.size + key_c.size + 2 * embed_dim * hd)
                      * in_itemsize
                      + 2 * hd * 4
                      + bsz * h * q_len * k_len * out_itemsize)
    cost = pl.CostEstimate(flops=int(flops), transcendentals=0,
                           bytes_accessed=int(bytes_accessed))

    out_bnqk = pl.pallas_call(
        kernel,
        out_shape=jax.ShapeDtypeStruct((bsz, h, q_len, k_len), out_dtype),
        grid_spec=pltpu.PrefetchScalarGridSpec(
            num_scalar_prefetch=0,
            grid=grid,
            in_specs=[
                pl.BlockSpec((1, tq, embed_dim), lambda b, qi, ki: (b, qi, 0)),
                pl.BlockSpec((1, tk, embed_dim), lambda b, qi, ki: (b, ki, 0)),
                pl.BlockSpec((embed_dim, hd), lambda b, qi, ki: (0, 0)),
                pl.BlockSpec((1, hd), lambda b, qi, ki: (0, 0)),
                pl.BlockSpec((embed_dim, hd), lambda b, qi, ki: (0, 0)),
                pl.BlockSpec((1, hd), lambda b, qi, ki: (0, 0)),
            ],
            out_specs=pl.BlockSpec((1, h, tq, tk),
                                   lambda b, qi, ki: (b, 0, qi, ki)),
            scratch_shapes=[pltpu.VMEM((tq, hd), compute_dtype)],
        ),
        compiler_params=pltpu.CompilerParams(
            # ki must stay "arbitrary" so the q_cache scratch is valid; b and
            # qi carry the megacore parallelism on v7x.
            dimension_semantics=("parallel", "parallel", "arbitrary"),
            vmem_limit_bytes=48 * 1024 * 1024),
        cost_estimate=cost,
    )(query_c, key_c, wq_t, bq_r, wk_t, bk_r)

    if output_layout == "bnqk":
        # Lane-dense (b, H, q, k): preferred when the consumer can take it.
        return out_bnqk
    # TODO(synk): fuse this re-layout into the kernel (write (b, q, k*H)
    # interleaved blocks) to avoid the extra HBM pass, once Mosaic supports
    # the required (H,tq,tk)->(tq,tk*H) minor-dim relayout robustly.
    return jnp.transpose(out_bnqk, (0, 2, 3, 1))


def _reference(query, key, wq, bq, wk, bk, *, num_heads, qk_dim):
    """Pure-JAX reference of the PyTorch forward (PyTorch weight layout)."""
    bsz, q_len, _ = query.shape
    _, k_len, _ = key.shape
    scaling = float(qk_dim) ** (-0.5)
    q = (query @ wq.T + bq) * scaling
    k = key @ wk.T + bk
    q = q.reshape(bsz, q_len, num_heads, qk_dim)
    k = k.reshape(bsz, k_len, num_heads, qk_dim)
    return jnp.einsum('bqnd,bknd->bqkn', q, k)


if __name__ == "__main__":
    # Small deterministic config.
    embed_dim = 32
    num_heads = 4
    qk_dim = embed_dim // num_heads     # 8
    bsz, q_len, k_len = 2, 8, 8
    hd = num_heads * qk_dim

    key0 = jax.random.PRNGKey(0)
    k_q, k_k, k_wq, k_wk = jax.random.split(key0, 4)

    query = jax.random.normal(k_q, (bsz, q_len, embed_dim), dtype=jnp.float32)
    keyx = jax.random.normal(k_k, (bsz, k_len, embed_dim), dtype=jnp.float32)

    # Parameters: xavier_normal_ on (out=hd, in=embed_dim) weights, zero biases.
    xavier_std = math.sqrt(2.0 / (embed_dim + hd))
    wq = jax.random.normal(k_wq, (hd, embed_dim), dtype=jnp.float32) * xavier_std
    wk = jax.random.normal(k_wk, (hd, embed_dim), dtype=jnp.float32) * xavier_std
    bq = jnp.zeros((hd,), dtype=jnp.float32)
    bk = jnp.zeros((hd,), dtype=jnp.float32)

    ref = _reference(query, keyx, wq, bq, wk, bk,
                     num_heads=num_heads, qk_dim=qk_dim)

    # 1) Strict PyTorch parity: f32 compute / f32 output, (b, q, k, H) layout.
    out_f32 = interaction_layer(query, keyx, wq, bq, wk, bk,
                                num_heads=num_heads, qk_dim=qk_dim,
                                compute_dtype=jnp.float32,
                                out_dtype=jnp.float32,
                                output_layout="bqkn")
    out_f32 = jax.block_until_ready(out_f32)
    assert out_f32.shape == (bsz, q_len, k_len, num_heads), out_f32.shape
    assert jnp.allclose(out_f32, ref, atol=1e-4, rtol=1e-4), \
        float(jnp.max(jnp.abs(out_f32 - ref)))

    # 2) Performance defaults: bf16 compute + bf16 output, lane-dense bnqk.
    out_bf16 = interaction_layer(query, keyx, wq, bq, wk, bk,
                                 num_heads=num_heads, qk_dim=qk_dim,
                                 output_layout="bnqk")
    out_bf16 = jax.block_until_ready(out_bf16)
    assert out_bf16.shape == (bsz, num_heads, q_len, k_len), out_bf16.shape
    ref_bnqk = jnp.transpose(ref, (0, 3, 1, 2))
    bf16_err = float(jnp.max(jnp.abs(out_bf16.astype(jnp.float32) - ref_bnqk)))
    assert bf16_err < 0.1, bf16_err

    print("KERNEL_OK")
</pallas_src>

<mosaic_0001>
module attributes {stable_mosaic.version = 11 : i64} {
  func.func @_interaction_kernel(%arg0: i32, %arg1: i32, %arg2: i32, %arg3: memref<1x8x32xf32, #tpu.memory_space<vmem>>, %arg4: memref<1x8x32xf32, #tpu.memory_space<vmem>>, %arg5: memref<32x32xf32, #tpu.memory_space<vmem>>, %arg6: memref<1x32xf32, #tpu.memory_space<vmem>>, %arg7: memref<32x32xf32, #tpu.memory_space<vmem>>, %arg8: memref<1x32xf32, #tpu.memory_space<vmem>>, %arg9: memref<1x4x8x8xf32, #tpu.memory_space<vmem>>, %arg10: memref<8x32xf32, #tpu.memory_space<vmem>>) attributes {dimension_semantics = [#tpu.dimension_semantics<parallel>, #tpu.dimension_semantics<parallel>, #tpu.dimension_semantics<arbitrary>], iteration_bounds = array<i64: 2, 1, 1>, scalar_prefetch = 0 : i64, scratch_operands = 1 : i64, tpu.core_type = #tpu.core_type<tc>, window_params = [{transform_indices = @transform_0, window_bounds = array<i64: 1, 8, 32>}, {transform_indices = @transform_1, window_bounds = array<i64: 1, 8, 32>}, {pipeline_mode = #tpu.pipeline_mode<synchronous>, transform_indices = @transform_2, window_bounds = array<i64: 32, 32>}, {pipeline_mode = #tpu.pipeline_mode<synchronous>, transform_indices = @transform_3, window_bounds = array<i64: 1, 32>}, {pipeline_mode = #tpu.pipeline_mode<synchronous>, transform_indices = @transform_4, window_bounds = array<i64: 32, 32>}, {pipeline_mode = #tpu.pipeline_mode<synchronous>, transform_indices = @transform_5, window_bounds = array<i64: 1, 32>}, {transform_indices = @transform_6, window_bounds = array<i64: 1, 4, 8, 8>}]} {
    %c0_i32 = arith.constant 0 : i32
    %0 = arith.cmpi eq, %arg2, %c0_i32 : i32
    %1 = arith.extui %0 : i1 to i32
    %c0_i32_0 = arith.constant 0 : i32
    %2 = arith.cmpi ne, %1, %c0_i32_0 : i32
    scf.if %2 {
      %c0_26 = arith.constant 0 : index
      %c0_27 = arith.constant 0 : index
      %c0_28 = arith.constant 0 : index
      %35 = vector.load %arg3[%c0_26, %c0_27, %c0_28] : memref<1x8x32xf32, #tpu.memory_space<vmem>>, vector<1x8x32xf32>
      %36 = vector.shape_cast %35 : vector<1x8x32xf32> to vector<8x32xf32>
      %c0_29 = arith.constant 0 : index
      %c0_30 = arith.constant 0 : index
      %37 = vector.load %arg5[%c0_29, %c0_30] : memref<32x32xf32, #tpu.memory_space<vmem>>, vector<32x32xf32>
      %cst_31 = arith.constant dense<0.000000e+00> : vector<8x32xf32>
      %38 = tpu.matmul %36, %37, %cst_31 {dimension_numbers = #tpu.dot_dimension_numbers<[1], [0], [0], [1], [0, 0, 1, 1], [], []>} : vector<8x32xf32>, vector<32x32xf32>, vector<8x32xf32> -> vector<8x32xf32>
      %c0_32 = arith.constant 0 : index
      %c0_33 = arith.constant 0 : index
      %39 = vector.load %arg6[%c0_32, %c0_33] : memref<1x32xf32, #tpu.memory_space<vmem>>, vector<1x32xf32>
      %40 = vector.broadcast %39 : vector<1x32xf32> to vector<8x32xf32>
      %41 = arith.addf %38, %40 : vector<8x32xf32>
      %cst_34 = arith.constant 0.353553385 : f32
      %42 = vector.broadcast %cst_34 : f32 to vector<8x32xf32>
      %43 = arith.mulf %41, %42 : vector<8x32xf32>
      %c0_35 = arith.constant 0 : index
      %c0_36 = arith.constant 0 : index
      %44 = vector.load %arg10[%c0_35, %c0_36] : memref<8x32xf32, #tpu.memory_space<vmem>>, vector<8x32xf32>
      tpu.vector_store %arg10[%c0_35, %c0_36], %43 {strides = array<i32>} : memref<8x32xf32, #tpu.memory_space<vmem>>, vector<8x32xf32>,
    } else {
    }
    %c0 = arith.constant 0 : index
    %c0_1 = arith.constant 0 : index
    %c0_2 = arith.constant 0 : index
    %3 = vector.load %arg4[%c0, %c0_1, %c0_2] : memref<1x8x32xf32, #tpu.memory_space<vmem>>, vector<1x8x32xf32>
    %4 = vector.shape_cast %3 : vector<1x8x32xf32> to vector<8x32xf32>
    %c0_3 = arith.constant 0 : index
    %c0_4 = arith.constant 0 : index
    %5 = vector.load %arg7[%c0_3, %c0_4] : memref<32x32xf32, #tpu.memory_space<vmem>>, vector<32x32xf32>
    %cst = arith.constant dense<0.000000e+00> : vector<8x32xf32>
    %6 = tpu.matmul %4, %5, %cst {dimension_numbers = #tpu.dot_dimension_numbers<[1], [0], [0], [1], [0, 0, 1, 1], [], []>} : vector<8x32xf32>, vector<32x32xf32>, vector<8x32xf32> -> vector<8x32xf32>
    %c0_5 = arith.constant 0 : index
    %c0_6 = arith.constant 0 : index
    %7 = vector.load %arg8[%c0_5, %c0_6] : memref<1x32xf32, #tpu.memory_space<vmem>>, vector<1x32xf32>
    %8 = vector.broadcast %7 : vector<1x32xf32> to vector<8x32xf32>
    %9 = arith.addf %6, %8 : vector<8x32xf32>
    %c0_7 = arith.constant 0 : index
    %c0_8 = arith.constant 0 : index
    %10 = vector.load %arg10[%c0_7, %c0_8] : memref<8x32xf32, #tpu.memory_space<vmem>>, vector<8x32xf32>
    %11 = vector.extract_strided_slice %10 {offsets = [0, 0], sizes = [8, 8], strides = [1, 1]} : vector<8x32xf32> to vector<8x8xf32>
    %12 = vector.extract_strided_slice %9 {offsets = [0, 0], sizes = [8, 8], strides = [1, 1]} : vector<8x32xf32> to vector<8x8xf32>
    "tpu.trace_start"() <{level = 10 : i32, message = "qd,kd->qk"}> : () -> ()
    %cst_9 = arith.constant dense<0.000000e+00> : vector<8x8xf32>
    %13 = tpu.matmul %11, %12, %cst_9 {dimension_numbers = #tpu.dot_dimension_numbers<[1], [1], [0], [0], [0, 0, 1, 0], [], []>} : vector<8x8xf32>, vector<8x8xf32>, vector<8x8xf32> -> vector<8x8xf32>
    "tpu.trace_stop"() : () -> ()
    %c0_10 = arith.constant 0 : index
    %c0_11 = arith.constant 0 : index
    %c0_12 = arith.constant 0 : index
    %c0_13 = arith.constant 0 : index
    %14 = vector.load %arg9[%c0_10, %c0_11, %c0_12, %c0_13] : memref<1x4x8x8xf32, #tpu.memory_space<vmem>>, vector<1x1x8x8xf32>
    %15 = vector.shape_cast %14 : vector<1x1x8x8xf32> to vector<8x8xf32>
    %16 = vector.shape_cast %13 : vector<8x8xf32> to vector<1x1x8x8xf32>
    tpu.vector_store %arg9[%c0_10, %c0_11, %c0_12, %c0_13], %16 {strides = array<i32>} : memref<1x4x8x8xf32, #tpu.memory_space<vmem>>, vector<1x1x8x8xf32>,
    %17 = vector.extract_strided_slice %10 {offsets = [0, 8], sizes = [8, 8], strides = [1, 1]} : vector<8x32xf32> to vector<8x8xf32>
    %18 = vector.extract_strided_slice %9 {offsets = [0, 8], sizes = [8, 8], strides = [1, 1]} : vector<8x32xf32> to vector<8x8xf32>
    "tpu.trace_start"() <{level = 10 : i32, message = "qd,kd->qk"}> : () -> ()
    %cst_14 = arith.constant dense<0.000000e+00> : vector<8x8xf32>
    %19 = tpu.matmul %17, %18, %cst_14 {dimension_numbers = #tpu.dot_dimension_numbers<[1], [1], [0], [0], [0, 0, 1, 0], [], []>} : vector<8x8xf32>, vector<8x8xf32>, vector<8x8xf32> -> vector<8x8xf32>
    "tpu.trace_stop"() : () -> ()
    %c0_15 = arith.constant 0 : index
    %c1 = arith.constant 1 : index
    %c0_16 = arith.constant 0 : index
    %c0_17 = arith.constant 0 : index
    %20 = vector.load %arg9[%c0_15, %c1, %c0_16, %c0_17] : memref<1x4x8x8xf32, #tpu.memory_space<vmem>>, vector<1x1x8x8xf32>
    %21 = vector.shape_cast %20 : vector<1x1x8x8xf32> to vector<8x8xf32>
    %22 = vector.shape_cast %19 : vector<8x8xf32> to vector<1x1x8x8xf32>
    tpu.vector_store %arg9[%c0_15, %c1, %c0_16, %c0_17], %22 {strides = array<i32>} : memref<1x4x8x8xf32, #tpu.memory_space<vmem>>, vector<1x1x8x8xf32>,
    %23 = vector.extract_strided_slice %10 {offsets = [0, 16], sizes = [8, 8], strides = [1, 1]} : vector<8x32xf32> to vector<8x8xf32>
    %24 = vector.extract_strided_slice %9 {offsets = [0, 16], sizes = [8, 8], strides = [1, 1]} : vector<8x32xf32> to vector<8x8xf32>
    "tpu.trace_start"() <{level = 10 : i32, message = "qd,kd->qk"}> : () -> ()
    %cst_18 = arith.constant dense<0.000000e+00> : vector<8x8xf32>
    %25 = tpu.matmul %23, %24, %cst_18 {dimension_numbers = #tpu.dot_dimension_numbers<[1], [1], [0], [0], [0, 0, 1, 0], [], []>} : vector<8x8xf32>, vector<8x8xf32>, vector<8x8xf32> -> vector<8x8xf32>
    "tpu.trace_stop"() : () -> ()
    %c0_19 = arith.constant 0 : index
    %c2 = arith.constant 2 : index
    %c0_20 = arith.constant 0 : index
    %c0_21 = arith.constant 0 : index
    %26 = vector.load %arg9[%c0_19, %c2, %c0_20, %c0_21] : memref<1x4x8x8xf32, #tpu.memory_space<vmem>>, vector<1x1x8x8xf32>
    %27 = vector.shape_cast %26 : vector<1x1x8x8xf32> to vector<8x8xf32>
    %28 = vector.shape_cast %25 : vector<8x8xf32> to vector<1x1x8x8xf32>
    tpu.vector_store %arg9[%c0_19, %c2, %c0_20, %c0_21], %28 {strides = array<i32>} : memref<1x4x8x8xf32, #tpu.memory_space<vmem>>, vector<1x1x8x8xf32>,
    %29 = vector.extract_strided_slice %10 {offsets = [0, 24], sizes = [8, 8], strides = [1, 1]} : vector<8x32xf32> to vector<8x8xf32>
    %30 = vector.extract_strided_slice %9 {offsets = [0, 24], sizes = [8, 8], strides = [1, 1]} : vector<8x32xf32> to vector<8x8xf32>
    "tpu.trace_start"() <{level = 10 : i32, message = "qd,kd->qk"}> : () -> ()
    %cst_22 = arith.constant dense<0.000000e+00> : vector<8x8xf32>
    %31 = tpu.matmul %29, %30, %cst_22 {dimension_numbers = #tpu.dot_dimension_numbers<[1], [1], [0], [0], [0, 0, 1, 0], [], []>} : vector<8x8xf32>, vector<8x8xf32>, vector<8x8xf32> -> vector<8x8xf32>
    "tpu.trace_stop"() : () -> ()
    %c0_23 = arith.constant 0 : index
    %c3 = arith.constant 3 : index
    %c0_24 = arith.constant 0 : index
    %c0_25 = arith.constant 0 : index
    %32 = vector.load %arg9[%c0_23, %c3, %c0_24, %c0_25] : memref<1x4x8x8xf32, #tpu.memory_space<vmem>>, vector<1x1x8x8xf32>
    %33 = vector.shape_cast %32 : vector<1x1x8x8xf32> to vector<8x8xf32>
    %34 = vector.shape_cast %31 : vector<8x8xf32> to vector<1x1x8x8xf32>
    tpu.vector_store %arg9[%c0_23, %c3, %c0_24, %c0_25], %34 {strides = array<i32>} : memref<1x4x8x8xf32, #tpu.memory_space<vmem>>, vector<1x1x8x8xf32>,
    return
  }
  func.func @transform_0(%arg0: i32, %arg1: i32, %arg2: i32) -> (i32, i32, i32) {
    %c0_i32 = arith.constant 0 : i32
    %c0_i32_0 = arith.constant 0 : i32
    return %arg0, %arg1, %c0_i32 : i32, i32, i32
  }
  func.func @transform_1(%arg0: i32, %arg1: i32, %arg2: i32) -> (i32, i32, i32) {
    %c0_i32 = arith.constant 0 : i32
    %c0_i32_0 = arith.constant 0 : i32
    return %arg0, %arg2, %c0_i32 : i32, i32, i32
  }
  func.func @transform_2(%arg0: i32, %arg1: i32, %arg2: i32) -> (i32, i32) {
    %c0_i32 = arith.constant 0 : i32
    %c0_i32_0 = arith.constant 0 : i32
    %c0_i32_1 = arith.constant 0 : i32
    return %c0_i32, %c0_i32_0 : i32, i32
  }
  func.func @transform_3(%arg0: i32, %arg1: i32, %arg2: i32) -> (i32, i32) {
    %c0_i32 = arith.constant 0 : i32
    %c0_i32_0 = arith.constant 0 : i32
    %c0_i32_1 = arith.constant 0 : i32
    return %c0_i32, %c0_i32_0 : i32, i32
  }
  func.func @transform_4(%arg0: i32, %arg1: i32, %arg2: i32) -> (i32, i32) {
    %c0_i32 = arith.constant 0 : i32
    %c0_i32_0 = arith.constant 0 : i32
    %c0_i32_1 = arith.constant 0 : i32
    return %c0_i32, %c0_i32_0 : i32, i32
  }
  func.func @transform_5(%arg0: i32, %arg1: i32, %arg2: i32) -> (i32, i32) {
    %c0_i32 = arith.constant 0 : i32
    %c0_i32_0 = arith.constant 0 : i32
    %c0_i32_1 = arith.constant 0 : i32
    return %c0_i32, %c0_i32_0 : i32, i32
  }
  func.func @transform_6(%arg0: i32, %arg1: i32, %arg2: i32) -> (i32, i32, i32, i32) {
    %c0_i32 = arith.constant 0 : i32
    %c0_i32_0 = arith.constant 0 : i32
    return %arg0, %c0_i32, %arg1, %arg2 : i32, i32, i32, i32
  }
}

</mosaic_0001>

<bundles_post_ra>
// kernel: tpu_custom_call.1
= control target key start
LH: loop header
LB: loop body
LE: loop exit
PB: predicated region body
PF: predicated region fallthrough
CT: control target
= control target key end

     0   :  { %s1805_s0 = inlined_call_operand.hbm [shape: f32[2,8,32], index: 0, kind: input, shape index: {}]   ;;  %s1806_s1 = inlined_call_operand.hbm [shape: f32[2,8,32], index: 1, kind: input, shape index: {}]   ;;  %s1807_s2 = inlined_call_operand.hbm [shape: f32[32,32], index: 2, kind: input, shape index: {}]   ;;  %s1808_s3 = inlined_call_operand.vmem [shape: f32[1,32], index: 3, kind: input, shape index: {}]   ;;  %s1809_s4 = inlined_call_operand.hbm [shape: f32[32,32], index: 4, kind: input, shape index: {}]   ;;  %s1810_s5 = inlined_call_operand.vmem [shape: f32[1,32], index: 5, kind: input, shape index: {}]   ;;  %s1811_s6 = inlined_call_operand.hbm [shape: f32[2,4,8,8], index: 6, kind: output, shape index: {}]  }
   0x1   :  { %1818 = sst [smem:[#allocation20_spill]] %s1807_s2 }
   0x2   :  { %1819 = sst [smem:[#allocation21_spill]] %s1809_s4 }
   0x3   :  { %11 = vsyncpa [#allocation4], 0 }
   0x4   :  { %13 = vsyncpa [#allocation4 + $0x1], 0 }
   0x5   :  { %14 = vsyncpa [#allocation7], 0 }
   0x6   :  { %16 = vsyncpa [#allocation7 + $0x1], 0 }
   0x7   :  { %17 = vsyncpa [#allocation10], 0 }
   0x8   :  { %18 = vsyncpa [#allocation5], 0 }
   0x9   :  { %20 = vsyncpa [#allocation5 + $0x1], 0  ;;  %s1475_s21 = smov 0   ;;  %s1477_s22 = smov 0  }
   0xa   :  { %s1479_s23 = smov 0   ;;  %s1481_s24 = smov 0  }
   0xb   :  { %s1483_s25 = smov 0   ;;  %s1485_s26 = smov 0  }
   0xc LB: > { %1820 = sst [smem:[#allocation17_spill]] %s1419_s25  ;;  %s1506_s27 = sadd.s32 4294967295, %s1423_s26   ;;  %s1423_s26 = sphi %s1485_s26, %s26_s26   ;;  %s1419_s25 = sphi %s1483_s25, %s1843_s25   ;;  %s1415_s24 = sphi %s1481_s24, %s1842_s24   ;;  %s1411_s23 = sphi %s1479_s23, %s1846_s23   ;;  %s1407_s22 = sphi %s1477_s22, %s1845_s22   ;;  %s1403_s21 = sphi %s1475_s21, %s1844_s21  }
   0xd   : > { %s1007_s28 = sadd.s32 4294967294, %s1423_s26   ;;  %p67_p0 = scmp.ne.s32.totalorder %s1407_s22, %s1403_s21 }
   0xe   : > { %p1812_p1 = scmp.eq.s32.totalorder %s1506_s27, 0  ;;  %p213_p3 = scmp.eq.s32.totalorder %s1007_s28, 1 }
   0xf   : > { %p1008_p5 = scmp.ge.s32.totalorder %s1423_s26, 1  ;;  %p220_p7 = scmp.lt.s32.totalorder %s1423_s26, 3 }
  0x10   : > { %p1515_p4 = por %p1812_p1, %p67_p0  ;;  %p1520_p6 = por %p213_p3, %p67_p0 }
  0x11   : > { %p1525_p8 = pnand %p1008_p5, %p220_p7  ;;  %s1425_s8 = smov [#allocation8]  }
  0x12   : > { %s1821_s29 = scalar_select %p1515_p4, 1, 0 }
  0x13   : > { %s1822_s30 = scalar_select %p1520_p6, 1, 0 }
  0x14   : > { %s1823_s7 = scalar_select %p1525_p8, 1, 0 }
  0x15   : > { %s232_s9 = sshll.u32 %s1425_s8, 4  ;;  %p1129_p9 = pneg %p1525_p8  ;;  %s1529_s9 = int_to_ptr.vmem [resolvable:$true] %s232_s9 }
  0x16   : > { %s1426_s11 = smov [#allocation9]   ;;  %s1825_s2 = sld [smem:[#allocation20_spill]] }
  0x17   : > { %p1536_p11 = pnand %p1129_p9, %p1812_p1  ;;  %s248_s12 = sshll.u32 %s1426_s11, 4  ;;  %s1540_s12 = int_to_ptr.vmem [resolvable:$true] %s248_s12 }
  0x19   : > { %p1215_p13 = pneg %p1536_p11 }
  0x1c   : > { %s1213_s15 = scalar_lea.hbm %s1825_s2, 512 }
  0x1d   : > { %p1214_p12 = scmp.ne.s32.totalorder %s1825_s2, %s1213_s15  ;;  %p1220_p5 = scmp.lt.u32.totalorder %s1213_s15, %s1825_s2 }
  0x1f   : > { %p1216_p0 = pnand %p1215_p13, %p1214_p12 }
  0x21   : > { %p1217_p3 = pneg %p1216_p0 }
  0x23   : > { %p1222_p7 = pnand %p1220_p5, %p1217_p3 }
  0x25   : > { %1225 = shalt.err (!%p1222_p7)
}
  0x26   : > { %s1226_s20 = scalar_lea.vmem %s1529_s9, 512  ;;  %p1234_p2 = scmp.lt.s32.totalorder %s1529_s9, %s1529_s9 }
  0x27   : > { %p1227_p9 = scmp.ne.s32.totalorder %s1529_s9, %s1226_s20  ;;  %p1235_p12 = scmp.lt.s32.totalorder %s1226_s20, %s1226_s20 }
  0x29   : > { %p1229_p10 = pnand %p1227_p9, %p1215_p13  ;;  %p1236_p0 = por %p1235_p12, %p1234_p2 }
  0x2b   : > { %p1230_p1 = pneg %p1229_p10 }
  0x2d   : > { %p1237_p6 = pnand %p1236_p0, %p1230_p1 }
  0x2f   : > { %1240 = shalt.err (!%p1237_p6)
}
  0x30   : > { %s1427_s28 = smov 128   ;;  %s1428_s8 = smov 8  }
  0x31   : > { %1132 = dma.hbm_to_vmem [thread:$0]  (!%p1536_p11), %s1825_s2, 512, %s1529_s9, [#allocation7], %s1427_s28, %s1427_s28, %s1428_s8  }
  0x32   : > { %s1826_s4 = sld [smem:[#allocation21_spill]] }
  0x38   : > { %s1241_s16 = scalar_lea.hbm %s1826_s4, 512 }
  0x39   : > { %p1242_p2 = scmp.ne.s32.totalorder %s1826_s4, %s1241_s16  ;;  %p1248_p10 = scmp.lt.u32.totalorder %s1241_s16, %s1826_s4 }
  0x3b   : > { %p1244_p1 = pnand %p1242_p2, %p1215_p13 }
  0x3d   : > { %p1245_p6 = pneg %p1244_p1 }
  0x3f   : > { %p1250_p3 = pnand %p1248_p10, %p1245_p6 }
  0x41   : > { %1253 = shalt.err (!%p1250_p3)
}
  0x42   : > { %s1254_s9 = scalar_lea.vmem %s1540_s12, 512  ;;  %p1262_p12 = scmp.lt.s32.totalorder %s1540_s12, %s1540_s12 }
  0x43   : > { %p1255_p5 = scmp.ne.s32.totalorder %s1540_s12, %s1254_s9  ;;  %p1263_p0 = scmp.lt.s32.totalorder %s1254_s9, %s1254_s9 }
  0x45   : > { %p1257_p7 = pnand %p1255_p5, %p1215_p13  ;;  %p1264_p2 = por %p1263_p0, %p1262_p12 }
  0x47   : > { %p1258_p9 = pneg %p1257_p7 }
  0x49   : > { %p1265_p1 = pnand %p1264_p2, %p1258_p9 }
  0x4b   : > { %1268 = shalt.err (!%p1265_p1)
}
  0x4c   : > { %1135 = dma.hbm_to_vmem [thread:$0]  (!%p1536_p11), %s1826_s4, 512, %s1540_s12, [#allocation10], %s1427_s28, %s1427_s28, %s1428_s8  }
  0x4d   : > { %s45_s14 = sadd.s32 1, %s1419_s25  ;;  %s54_s15 = sadd.s32 1, %s1411_s23 }
  0x4e   : > { %p47_p13 = scmp.ge.s32.totalorder %s45_s14, 2  ;;  %p61_p6 = scmp.ne.s32.totalorder %s1411_s23, %s1407_s22 }
  0x4f   : > { %p62_p10 = scmp.eq.s32.totalorder %s1423_s26, 0  ;;  %p1149_p3 = scmp.lt.s32.totalorder %s1423_s26, 2 }
  0x50   : > { %s1848_s14 = smov (%p47_p13, %s45_s14), 0  ;;  %p1828_p7 = scmp.eq.s32.totalorder %s1506_s27, 1 }
  0x51   : > { %1827 = sst [smem:[#allocation18_spill]] %s1848_s14  ;;  %p63_p5 = por %p62_p10, %p61_p6 }
  0x52   : > { %p1604_p9 = por %p1828_p7, %p61_p6  ;;  %s49_s16 = ssub.s32 %s1419_s25, %s1848_s14 }
  0x53   : > { %s265_s17 = sand.u32 1, %s1411_s23   ;;  %p52_p12 = scmp.eq.s32.totalorder %s49_s16, 0 }
  0x54   : > { %s1829_s10 = scalar_select %p1604_p9, 1, 0 }
  0x55   : > { %s1611_s12 = sshll.u32 %s265_s17, 3  ;;  %s1013_s28 = sshll.u32 %s1419_s25, 7 }
  0x56   : > { %s1615_s8 = scalar_select %p52_p12, %s1411_s23, %s54_s15  }
  0x57   : > { %s1620_s20 = scalar_lea.hbm %s1805_s0, %s1013_s28  ;;  %s269_s9 = scalar_lea.vmem [#allocation3], %s1611_s12 }
  0x58   : > { %1830 = sst [smem:[#allocation19_spill]] %s1615_s8  ;;  %s277_s11 = sshll.u32 %s269_s9, 4  ;;  %s1629_s11 = int_to_ptr.vmem [resolvable:$true] %s277_s11 }
  0x59   : > { %p1625_p11 = pnand %p1149_p3, %p63_p5  ;;  %s1634_s18 = scalar_lea.hbm %s1806_s1, %s1013_s28 }
  0x5a   : > { %s266_s19 = scalar_lea.sflag [#allocation4], %s265_s17  ;;  %s1269_s2 = scalar_lea.hbm %s1620_s20, 128 }
  0x5b   : > { %p1270_p0 = scmp.ne.s32.totalorder %s1620_s20, %s1269_s2  ;;  %p1271_p2 = pneg %p1625_p11 }
  0x5c   : > { %s1274_s14 = scalar_lea.hbm %s1805_s0, 256  ;;  %p1275_p6 = scmp.lt.u32.totalorder %s1620_s20, %s1805_s0 }
  0x5d   : > { %p1272_p1 = pnand %p1271_p2, %p1270_p0  ;;  %p1276_p10 = scmp.lt.u32.totalorder %s1274_s14, %s1269_s2 }
  0x5e   : > { %p1278_p5 = scmp.lt.u32.totalorder %s1269_s2, %s1620_s20 }
  0x5f   : > { %p1273_p13 = pneg %p1272_p1  ;;  %p1277_p3 = por %p1276_p10, %p1275_p6 }
  0x61   : > { %p1279_p7 = por %p1278_p5, %p1277_p3 }
  0x63   : > { %p1280_p12 = pnand %p1279_p7, %p1273_p13 }
  0x65   : > { %1283 = shalt.err (!%p1280_p12)
}
  0x66   : > { %s1284_s17 = scalar_lea.vmem %s1629_s11, 128  ;;  %s1429_s4 = smov [#allocation3]  }
  0x67   : > { %p1285_p0 = scmp.ne.s32.totalorder %s1629_s11, %s1284_s17  ;;  %s1289_s28 = sshll.u32 %s1429_s4, 4  ;;  %s1290_s28 = int_to_ptr.vmem [resolvable:$false] %s1289_s28 }
  0x68   : > { %s1291_s25 = scalar_lea.vmem %s1290_s28, 256  ;;  %p1292_p4 = scmp.lt.s32.totalorder %s1629_s11, %s1290_s28 }
  0x69   : > { %p1287_p1 = pnand %p1285_p0, %p1271_p2  ;;  %p1293_p6 = scmp.lt.s32.totalorder %s1291_s25, %s1284_s17 }
  0x6b   : > { %p1288_p9 = pneg %p1287_p1  ;;  %p1294_p10 = por %p1293_p6, %p1292_p4 }
  0x6d   : > { %p1295_p3 = pnand %p1294_p10, %p1288_p9 }
  0x6f   : > { %1298 = shalt.err (!%p1295_p3)
}
  0x70   : > { %1139 = dma.hbm_to_vmem [thread:$0]  (!%p1625_p11), %s1620_s20, 128, %s1629_s11, %s266_s19  }
  0x71   : > { %s284_s2 = sand.u32 1, %s1423_s26   ;;  %s288_s14 = scalar_lea.vmem [#allocation6], %s1611_s12 }
  0x72   : > { %s296_s8 = sshll.u32 %s288_s14, 4  ;;  %s285_s15 = scalar_lea.sflag [#allocation7], %s284_s2  ;;  %s297_s8 = int_to_ptr.vmem [resolvable:$true] %s296_s8 }
  0x73   : > { %s1299_s16 = scalar_lea.hbm %s1634_s18, 128  ;;  %s1304_s4 = scalar_lea.hbm %s1806_s1, 256 }
  0x74   : > { %p1300_p4 = scmp.ne.s32.totalorder %s1634_s18, %s1299_s16  ;;  %p1305_p5 = scmp.lt.u32.totalorder %s1634_s18, %s1806_s1 }
  0x75   : > { %p1306_p7 = scmp.lt.u32.totalorder %s1304_s4, %s1299_s16  ;;  %p1308_p0 = scmp.lt.u32.totalorder %s1299_s16, %s1634_s18 }
  0x76   : > { %p1302_p9 = pnand %p1300_p4, %p1271_p2 }
  0x77   : > { %p1307_p12 = por %p1306_p7, %p1305_p5 }
  0x78   : > { %p1303_p13 = pneg %p1302_p9 }
  0x79   : > { %p1309_p1 = por %p1308_p0, %p1307_p12 }
  0x7b   : > { %p1310_p6 = pnand %p1309_p1, %p1303_p13 }
  0x7d   : > { %1313 = shalt.err (!%p1310_p6)
}
  0x7e   : > { %s1314_s12 = scalar_lea.vmem %s297_s8, 128  ;;  %s1430_s20 = smov [#allocation6]  }
  0x7f   : > { %p1315_p10 = scmp.ne.s32.totalorder %s297_s8, %s1314_s12  ;;  %s1319_s11 = sshll.u32 %s1430_s20, 4  ;;  %s1320_s11 = int_to_ptr.vmem [resolvable:$false] %s1319_s11 }
  0x80   : > { %s1321_s19 = scalar_lea.vmem %s1320_s11, 256  ;;  %p1322_p9 = scmp.lt.s32.totalorder %s297_s8, %s1320_s11 }
  0x81   : > { %p1317_p3 = pnand %p1315_p10, %p1271_p2  ;;  %p1323_p8 = scmp.lt.s32.totalorder %s1321_s19, %s1314_s12 }
  0x83   : > { %p1318_p4 = pneg %p1317_p3  ;;  %p1324_p5 = por %p1323_p8, %p1322_p9 }
  0x85   : > { %p1325_p7 = pnand %p1324_p5, %p1318_p4 }
  0x87   : > { %1328 = shalt.err (!%p1325_p7)
}
  0x88   : > { %1142 = dma.hbm_to_vmem [thread:$0]  (!%p1625_p11), %s1634_s18, 128, %s297_s8, %s285_s15  }
  0x89   : > { %p1832_p13 = scmp.ne.s32.totalorder %s1823_s7, 0 }
  0x8a   : > { %s1685_s2 = sand.u32 (!%p1832_p13), 1, %s1407_s22   ;;  %p1833_p8 = scmp.ne.s32.totalorder (!%p1832_p13), %s1821_s29, 0 }
  0x8b   : > { %305 = sbr.rel (%p1832_p13) target bundleno = 738 (0x2e2), region = 44  ;;  %s1017_s14 = sshll.u32 (!%p1832_p13), %s1685_s2, 3 }
  0x8c   : > { %s308_s16 = scalar_lea.sflag (!%p1832_p13), [#allocation4], %s1685_s2  ;;  %s1689_s9 = scalar_lea.vmem (!%p1832_p13), [#allocation3], %s1017_s14 }
  0x92   : > { %1382 = dma.done.wait (%p1833_p8), %s308_s16, 128  }
  0x93   : > { %1384 = vsyncadd (%p1833_p8), %s308_s16, 4294967168  ;;  %s316_s13 = sand.u32 1, %s1506_s27   ;;  %s1696_s18 = scalar_lea.vmem [#allocation6], %s1017_s14 }
  0x94   : > { %s317_s7 = scalar_lea.sflag [#allocation7], %s316_s13 }
  0x95   : > { %1386 = dma.done.wait (%p1833_p8), %s317_s7, 128  }
  0x96   : > { %1388 = vsyncadd (%p1833_p8), %s317_s7, 4294967168  ;;  %p1834_p11 = scmp.eq.s32.totalorder %s1506_s27, 0 }
  0x98   : > { %1390 = dma.done.wait (%p1834_p11), [#allocation7], 512   ;;  %p1835_p2 = pmov %p1834_p11 }
  0x9a   : > { %1392 = vsyncadd (%p1835_p2), [#allocation7], 4294966784  ;;  %p1836_p12 = pmov %p1835_p2 }
  0x9b   : > { %p1837_p0 = pmov %p1835_p2 }
  0x9c   : > { %1394 = dma.done.wait (%p1836_p12), [#allocation10], 512  }
  0x9d   : > { %1396 = vsyncadd (%p1837_p0), [#allocation10], 4294966784  ;;  %v1431_v0 = vmov 0.0|0.0   ;;  %vm1432_vm0 = vmmov 0   ;;  %v1433_v1 = vmov 0.0   ;;  %v367_v2 = vld [vmem:[#allocation8] sm:$0xff] }
  0x9e   : > { %1103 = vmatprep.subr.bf16.mxu0 %v1431_v0  ;;  %1109 = vmatprep.subr.bf16.mxu1 %v1431_v0  ;;  %v368_v3 = vld [vmem:[#allocation8 + $0x8] sm:$0xff]  ;;  %v455_v4 = vld [vmem:[#allocation9] sm:$0xff]  ;;  %v369_v7 = vld [vmem:[#allocation8 + $0x10] sm:$0xff]  ;;  %vm378_vm1 = vcmask 261120   ;;  %vm541_vm2 = vcmask 64512   ;;  %s1434_s17 = smov 112  }
  0x9f   : > { %1069 = vmatprep.mubr.msk.f32.mxu0 %vm1432_vm0, %v1433_v1  ;;  %1080 = vmatprep.mubr.msk.f32.mxu1 %vm1432_vm0, %v1433_v1  ;;  %v1104_v5 = vpack.c.bf16 %v368_v3, %v367_v2  ;;  %v456_v6 = vld [vmem:[#allocation9 + $0x8] sm:$0xff]  ;;  %v370_v8 = vld [vmem:[#allocation8 + $0x18] sm:$0xff]  ;;  %v457_v10 = vld [vmem:[#allocation9 + $0x10] sm:$0xff]  ;;  %s1435_s4 = smov 120   ;;  %s1436_s28 = smov 104  }
  0xa0   : > { %v1110_v9 = vpack.c.bf16 %v456_v6, %v455_v4  ;;  %v458_v11 = vld [vmem:[#allocation9 + $0x18] sm:$0xff]  ;;  %v1107_v12 = vpack.c.bf16 %v370_v8, %v369_v7  ;;  %v366_v14 = vld [vmem:[%s1689_s9] sm:$0xff]  ;;  %s1021_s25 = sshll.u32 %s1685_s2, 5  ;;  %s1042_s11 = sshll.u32 %s1415_s24, 9 }
  0xa1   : > { %1105 = vmatpush3.bf16.msra.mxu0 %v1104_v5  ;;  %v1113_v13 = vpack.c.bf16 %v458_v11, %v457_v10  ;;  %v454_v15 = vld [vmem:[%s1696_s18] sm:$0xff]  ;;  %s361_s12 = scalar_lea.vmem [#allocation11], %s1021_s25  ;;  %s1754_s16 = scalar_lea.hbm %s1811_s6, %s1042_s11 }
  0xa2   : > { %1111 = vmatpush3.bf16.msra.mxu1 %v1110_v9  ;;  %1106 = vmatprep.subr.bf16.mxu0 %v1431_v0  ;;  %v1022_v16 = vld [vmem:[%s1808_s3] ss:$0 sm:$0xff]  ;;  %s875_s20 = sshll.u32 %s361_s12, 4  ;;  %s860_s24 = scalar_lea.sflag [#allocation5], %s1685_s2  ;;  %s1748_s20 = int_to_ptr.vmem [resolvable:$true] %s875_s20 }
  0xa3   : > { %1112 = vmatprep.subr.bf16.mxu1 %v1431_v0  ;;  %v1024_v17 = vld [vmem:[%s1810_s5] ss:$0 sm:$0xff]  ;;  %s1329_s9 = scalar_lea.vmem %s1748_s20, 512  ;;  %p1838_p6 = scmp.ne.s32.totalorder %s1829_s10, 0 }
  0xa4   : > { %p1330_p1 = scmp.ne.s32.totalorder %s1748_s20, %s1329_s9  ;;  %s1437_s13 = smov [#allocation11]  }
  0xa5   : > { %1108 = vmatpush3.bf16.msra.mxu0 %v1107_v12  ;;  %s1333_s7 = sshll.u32 %s1437_s13, 4  ;;  %s1334_s7 = int_to_ptr.vmem [resolvable:$false] %s1333_s7 }
  0xa6   : > { %1114 = vmatpush3.bf16.msra.mxu1 %v1113_v13  ;;  %1083 = vmatprep.subr.mxu0 %v1433_v1  ;;  %p1331_p10 = pnand %p1330_p1, %p1838_p6  ;;  %s1335_s18 = scalar_lea.vmem %s1334_s7, 1024 }
  0xa7   : > { %1088 = vmatprep.subr.mxu1 %v1433_v1  ;;  %p1336_p4 = scmp.lt.s32.totalorder %s1748_s20, %s1334_s7  ;;  %p1337_p9 = scmp.lt.s32.totalorder %s1335_s18, %s1329_s9 }
  0xa8   : > { %1070 = vmatmul.mubr.msk.f32.vlgmr.msra.gmra.mrb[0].mxu0 %vm378_vm1, %v366_v14  ;;  %p1332_p3 = pneg %p1331_p10 }
  0xa9   : > { %1081 = vmatmul.mubr.msk.f32.vlgmr.msra.gmra.mrb[0].mxu1 %vm378_vm1, %v454_v15  ;;  %1085 = vmatprep.mubr.msk.f32.mxu0 %vm1432_vm0, %v1433_v1  ;;  %p1338_p5 = por %p1337_p9, %p1336_p4 }
  0xaa   : > { %1090 = vmatprep.mubr.msk.f32.mxu1 %vm1432_vm0, %v1433_v1 }
  0xab   : > { %p1339_p7 = pnand %p1338_p5, %p1332_p3 }
 0x17b   : > { %v448_v18 = vpop.f32.mrb[0].mxu0 }
 0x17c   : > { %v449_v19 = vadd.f32 %v1022_v16, %v448_v18  ;;  %v1071_v20 = vpop.f32.mrb[1].mxu0  ;;  %v536_v21 = vpop.f32.mrb[0].mxu1 }
 0x17d   : > { %v537_v22 = vadd.f32 %v1024_v17, %v536_v21  ;;  %v1082_v23 = vpop.f32.mrb[1].mxu1 }
 0x17e   : > { %v452_v24 = vmul.f32 0.35355338, %v449_v19 }
 0x17f   : > { %701 = vrot.lane.b32.xlu1 %v537_v22, %s1434_s17  ;;  %621 = vrot.lane.b32.xlu0 %v537_v22, %s1435_s4 }
 0x180   : > { %453 = vst.msk [vmem:[#allocation2] sm:$0xff] %vm378_vm1, %v452_v24  ;;  %1084 = vmatpush3.xpose.msk.msra.mxu0 %vm541_vm2, %v537_v22 }
 0x181   : > { %1093 = vmatprep.subr.mxu0 %v1433_v1 }
 0x183   : > { %781 = vrot.lane.b32.xlu1 %v537_v22, %s1436_s28 }
 0x187   : > { %v540_v25 = vld [vmem:[#allocation2] sm:$0xff] }
 0x188   : > { %779 = vrot.lane.b32.xlu1 %v540_v25, %s1436_s28  ;;  %619 = vrot.lane.b32.xlu0 %v540_v25, %s1435_s4 }
 0x189   : > { %1086 = vmatmul.mubr.msk.f32.vlgmr.msra.gmra.mrb[2].mxu0 %vm541_vm2, %v540_v25 }
 0x18a   : > { %1095 = vmatprep.mubr.msk.f32.mxu0 %vm1432_vm0, %v1433_v1 }
 0x18c   : > { %699 = vrot.lane.b32.xlu0 %v540_v25, %s1434_s17 }
 0x1f1   : > { %v702_v26 = vpop.permute.xlu1 %701  ;;  %v622_v27 = vpop.permute.xlu0 %621 }
 0x1f2   : > { %1089 = vmatpush3.xpose.msk.msra.mxu1 %vm541_vm2, %v622_v27  ;;  %1094 = vmatpush3.xpose.msk.msra.mxu0 %vm541_vm2, %v702_v26 }
 0x1f3   : > { %1098 = vmatprep.subr.mxu1 %v1433_v1 }
 0x1f5   : > { %v782_v28 = vpop.permute.xlu1 %781 }
 0x1fa   : > { %v620_v29 = vpop.permute.xlu0 %619  ;;  %v780_v30 = vpop.permute.xlu1 %779 }
 0x1fb   : > { %1091 = vmatmul.mubr.msk.f32.vlgmr.msra.gmra.mrb[2].mxu1 %vm541_vm2, %v620_v29 }
 0x1fc   : > { %1099 = vmatpush3.xpose.msk.msra.mxu1 %vm541_vm2, %v782_v28  ;;  %1100 = vmatprep.mubr.msk.f32.mxu1 %vm1432_vm0, %v1433_v1 }
 0x1fe   : > { %v700_v31 = vpop.permute.xlu0 %699 }
 0x1ff   : > { %1096 = vmatmul.mubr.msk.f32.vlgmr.msra.gmra.mrb[4].mxu0 %vm541_vm2, %v700_v31  ;;  %1101 = vmatmul.mubr.msk.f32.vlgmr.msra.gmra.mrb[4].mxu1 %vm541_vm2, %v780_v30 }
 0x25c   : > { %v614_v32 = vpop.f32.mrb[2].mxu0 }
 0x25d   : > { %618 = vst.msk [vmem:[%s361_s12] sm:$0xff] %vm541_vm2, %v614_v32  ;;  %v1087_v33 = vpop.f32.mrb[3].mxu0 }
 0x2ce   : > { %v693_v34 = vpop.f32.mrb[2].mxu1 }
 0x2cf   : > { %1030 = vst.msk [vmem:[%s361_s12 + $0x8] sm:$0xff] %vm541_vm2, %v693_v34  ;;  %v1092_v35 = vpop.f32.mrb[3].mxu1 }
 0x2d2   : > { %v773_v36 = vpop.f32.mrb[4].mxu0  ;;  %v853_v37 = vpop.f32.mrb[4].mxu1 }
 0x2d3   : > { %1033 = vst.msk [vmem:[%s361_s12 + $0x10] sm:$0xff] %vm541_vm2, %v773_v36  ;;  %1036 = vst.msk [vmem:[%s361_s12 + $0x18] sm:$0xff] %vm541_vm2, %v853_v37  ;;  %v1097_v38 = vpop.f32.mrb[5].mxu0  ;;  %v1102_v39 = vpop.f32.mrb[5].mxu1 }
 0x2d4   : > { %1342 = shalt.err (!%p1339_p7)
}
 0x2d5   : > { %s1343_s27 = scalar_lea.hbm %s1754_s16, 512  ;;  %s1347_s15 = scalar_lea.hbm %s1811_s6, 1024 }
 0x2d6   : > { %p1344_p13 = scmp.ne.s32.totalorder %s1754_s16, %s1343_s27  ;;  %p1348_p2 = scmp.lt.u32.totalorder %s1754_s16, %s1811_s6 }
 0x2d7   : > { %p1349_p12 = scmp.lt.u32.totalorder %s1347_s15, %s1343_s27  ;;  %p1351_p1 = scmp.lt.u32.totalorder %s1343_s27, %s1754_s16 }
 0x2d8   : > { %p1345_p8 = pnand %p1344_p13, %p1838_p6 }
 0x2d9   : > { %p1350_p0 = por %p1349_p12, %p1348_p2 }
 0x2da   : > { %p1346_p11 = pneg %p1345_p8 }
 0x2db   : > { %p1352_p10 = por %p1351_p1, %p1350_p0 }
 0x2dd   : > { %p1353_p3 = pnand %p1352_p10, %p1346_p11 }
 0x2df   : > { %1356 = shalt.err (!%p1353_p3)
}
 0x2e0   : > { %s1438_s28 = smov 128   ;;  %s1439_s25 = smov 8  }
 0x2e1   : > { %1127 = dma.vmem_to_hbm [thread:$0]  (%p1838_p6), %s1748_s20, 512, %s1754_s16, %s860_s24, %s1438_s28, %s1438_s28, %s1439_s25  }
 0x2e2 PF: > { %s890_s12 = sand.u32 1, %s1403_s21   ;;  %p1839_p4 = scmp.ne.s32.totalorder %s1822_s30, 0 }
 0x2e3   : > { %p1840_p9 = scmp.ge.s32.totalorder %s1423_s26, 2  ;;  %s891_s11 = scalar_lea.sflag [#allocation5], %s890_s12 }
 0x2e5   : > { %p1144_p5 = pnand %p1840_p9, %p1839_p4 }
 0x2e7   : > { %1398 = dma.done.wait (!%p1144_p5), %s891_s11, 512  }
 0x2e8   : > { %1400 = vsyncadd (!%p1144_p5), %s891_s11, 4294966784  ;;  %s26_s26 = sadd.s32 1, %s1423_s26   ;;  %s1841_s19 = sld [smem:[#allocation19_spill]] }
 0x2e9   : > { %p23_p7 = scmp.ge.s32.totalorder %s26_s26, 4   ;;  %s1842_s24 = sld [smem:[#allocation17_spill]] }
 0x2ea   : > { %s1843_s25 = sld [smem:[#allocation18_spill]]  ;;  %s1844_s21 = smov %s1407_s22 }
 0x2eb   : > { %s1845_s22 = smov %s1411_s23  ;;  %25 = sbr.rel (!%p23_p7) target bundleno = 12 (0xc), region = 117 }
 0x2ee   : > { %s1846_s23 = smov %s1841_s19 }
 0x2f2   :  { %896 = vsyncpa [#allocation4], 1 }
 0x2f3   :  { %898 = vsyncpa [#allocation4 + $0x1], 1 }
 0x2f4   :  { %899 = vsyncpa [#allocation7], 1 }
 0x2f5   :  { %901 = vsyncpa [#allocation7 + $0x1], 1 }
 0x2f6   :  { %902 = vsyncpa [#allocation10], 1 }
 0x2f7   :  { %903 = vsyncpa [#allocation5], 1 }
 0x2f8   :  { %905 = vsyncpa [#allocation5 + $0x1], 1 }

</bundles_post_ra>
